<compile_context>
chip_gen: v7x
topology: tpu7x:2x2x1
jax: 0.10.0
libtpu: 0.0.40
codegen_flags: <defaults>
</compile_context>

<pallas_src>
import jax
import jax.numpy as jnp
from jax.experimental import pallas as pl
from jax.experimental.pallas import tpu as pltpu


def qnet_kernel(x_ref, w1_ref, b1_ref, w2_ref, b2_ref, w3_ref, b3_ref, o_ref):
    # fc1 + relu  (bf16 inputs -> f32 accumulation on the MXU)
    h1 = jnp.dot(x_ref[...], w1_ref[...], preferred_element_type=jnp.float32)
    h1 = jnp.maximum(h1 + b1_ref[...], 0.0)
    # fc2 + relu
    h2 = jnp.dot(h1.astype(w2_ref.dtype), w2_ref[...],
                 preferred_element_type=jnp.float32)
    h2 = jnp.maximum(h2 + b2_ref[...], 0.0)
    # fc3 (no activation)
    out = jnp.dot(h2.astype(w3_ref.dtype), w3_ref[...],
                  preferred_element_type=jnp.float32)
    o_ref[...] = (out + b3_ref[...]).astype(o_ref.dtype)


def _round_up(n, m):
    return ((n + m - 1) // m) * m


def qnetwork_forward(x, params, *, block_b=128):
    """x: (B, embed_dim + 1) float32.  params: dict of pre-transposed weights/biases.

    Returns (B, vocab_size) float32 Q-values.
    """
    # bf16 matmul operands (weights + input), f32 biases / accumulation.
    w1 = params["w1"].astype(jnp.bfloat16)
    w2 = params["w2"].astype(jnp.bfloat16)
    w3 = params["w3"].astype(jnp.bfloat16)
    b1 = params["b1"].astype(jnp.float32)
    b2 = params["b2"].astype(jnp.float32)
    b3 = params["b3"].astype(jnp.float32)
    x_bf = x.astype(jnp.bfloat16)

    B, in_dim = x.shape
    vocab = w3.shape[1]

    # Lane-align the fc1 contraction dim (zero-pad: contributes 0 to the dot).
    in_pad = _round_up(in_dim, 128)
    if in_pad != in_dim:
        x_bf = jnp.pad(x_bf, ((0, 0), (0, in_pad - in_dim)))
        w1 = jnp.pad(w1, ((0, in_pad - in_dim), (0, 0)))

    # Lane-align the output (vocab) dim so stores are unmasked vst.
    vocab_pad = _round_up(vocab, 128)
    if vocab_pad != vocab:
        w3 = jnp.pad(w3, ((0, 0), (0, vocab_pad - vocab)))
        b3 = jnp.pad(b3, ((0, 0), (0, vocab_pad - vocab)))

    # Batch tile: multiple of 8 sublanes; pad the batch up to whole tiles.
    tb = int(block_b)
    n_tiles = pl.cdiv(B, tb)
    b_pad = n_tiles * tb
    if b_pad != B:
        x_bf = jnp.pad(x_bf, ((0, b_pad - B), (0, 0)))

    resident = lambda a: pl.BlockSpec(a.shape, lambda i: (0,) * a.ndim)

    out = pl.pallas_call(
        qnet_kernel,
        out_shape=jax.ShapeDtypeStruct((b_pad, vocab_pad), jnp.float32),
        grid=(n_tiles,),
        in_specs=[
            pl.BlockSpec((tb, in_pad), lambda i: (i, 0)),    # x tile streams
            resident(w1), resident(b1),                       # weights/biases stay put
            resident(w2), resident(b2),
            resident(w3), resident(b3),
        ],
        out_specs=pl.BlockSpec((tb, vocab_pad), lambda i: (i, 0)),
        compiler_params=pltpu.CompilerParams(
            dimension_semantics=("parallel",),
        ),
    )(x_bf, w1, b1, w2, b2, w3, b3)

    return out[:B, :vocab]


def init_params(key, embed_dim, vocab_size, hidden=128):
    """Deterministic init mimicking torch.nn.Linear defaults (uniform +/- 1/sqrt(fan_in)).
    Weights are stored transposed: (in_features, out_features)."""
    in_dim = embed_dim + 1
    ks = jax.random.split(key, 6)

    def lin(kw, kb, fan_in, fan_out):
        bound = 1.0 / jnp.sqrt(fan_in)
        w = jax.random.uniform(kw, (fan_in, fan_out), jnp.float32, -bound, bound)
        b = jax.random.uniform(kb, (1, fan_out), jnp.float32, -bound, bound)
        return w, b

    w1, b1 = lin(ks[0], ks[1], in_dim, hidden)
    w2, b2 = lin(ks[2], ks[3], hidden, hidden)
    w3, b3 = lin(ks[4], ks[5], hidden, vocab_size)
    return dict(w1=w1, b1=b1, w2=w2, b2=b2, w3=w3, b3=b3)


if __name__ == "__main__":
    # Small, TPU-friendly shapes consistent with the module's structure:
    # embed_dim + 1 = 128 (lane-aligned input), hidden = 128 (as in the module),
    # vocab = 250 (exercises vocab padding to 256), batch = 200 (exercises
    # batch padding and a grid of 2 tiles).
    embed_dim = 127
    vocab_size = 250
    batch = 200

    key = jax.random.PRNGKey(0)
    k_x, k_p = jax.random.split(key)
    x = jax.random.normal(k_x, (batch, embed_dim + 1), jnp.float32)
    params = init_params(k_p, embed_dim, vocab_size)

    out = qnetwork_forward(x, params)
    out = jax.block_until_ready(out)

    # Reference in plain JAX with the same bf16-input / f32-accumulate precision path.
    xb = x.astype(jnp.bfloat16)
    w1b = params["w1"].astype(jnp.bfloat16)
    w2b = params["w2"].astype(jnp.bfloat16)
    w3b = params["w3"].astype(jnp.bfloat16)
    h1 = jnp.maximum(
        jnp.dot(xb, w1b, preferred_element_type=jnp.float32) + params["b1"], 0.0)
    h2 = jnp.maximum(
        jnp.dot(h1.astype(jnp.bfloat16), w2b, preferred_element_type=jnp.float32)
        + params["b2"], 0.0)
    ref = jnp.dot(h2.astype(jnp.bfloat16), w3b,
                  preferred_element_type=jnp.float32) + params["b3"]

    assert out.shape == (batch, vocab_size)
    assert jnp.allclose(out, ref, atol=2e-2, rtol=2e-2)

    print("KERNEL_OK")
</pallas_src>

<mosaic_0001>
module attributes {stable_mosaic.version = 11 : i64} {
  func.func @qnet_kernel(%arg0: i32, %arg1: memref<128x128xbf16, #tpu.memory_space<vmem>>, %arg2: memref<128x128xbf16, #tpu.memory_space<vmem>>, %arg3: memref<1x128xf32, #tpu.memory_space<vmem>>, %arg4: memref<128x128xbf16, #tpu.memory_space<vmem>>, %arg5: memref<1x128xf32, #tpu.memory_space<vmem>>, %arg6: memref<128x256xbf16, #tpu.memory_space<vmem>>, %arg7: memref<1x256xf32, #tpu.memory_space<vmem>>, %arg8: memref<128x256xf32, #tpu.memory_space<vmem>>) attributes {dimension_semantics = [#tpu.dimension_semantics<parallel>], iteration_bounds = array<i64: 2>, scalar_prefetch = 0 : i64, scratch_operands = 0 : i64, tpu.core_type = #tpu.core_type<tc>, window_params = [{transform_indices = @transform_0, window_bounds = array<i64: 128, 128>}, {pipeline_mode = #tpu.pipeline_mode<synchronous>, transform_indices = @transform_1, window_bounds = array<i64: 128, 128>}, {pipeline_mode = #tpu.pipeline_mode<synchronous>, transform_indices = @transform_2, window_bounds = array<i64: 1, 128>}, {pipeline_mode = #tpu.pipeline_mode<synchronous>, transform_indices = @transform_3, window_bounds = array<i64: 128, 128>}, {pipeline_mode = #tpu.pipeline_mode<synchronous>, transform_indices = @transform_4, window_bounds = array<i64: 1, 128>}, {pipeline_mode = #tpu.pipeline_mode<synchronous>, transform_indices = @transform_5, window_bounds = array<i64: 128, 256>}, {pipeline_mode = #tpu.pipeline_mode<synchronous>, transform_indices = @transform_6, window_bounds = array<i64: 1, 256>}, {transform_indices = @transform_7, window_bounds = array<i64: 128, 256>}]} {
    %c0 = arith.constant 0 : index
    %c0_0 = arith.constant 0 : index
    %0 = vector.load %arg1[%c0, %c0_0] : memref<128x128xbf16, #tpu.memory_space<vmem>>, vector<128x128xbf16>
    %c0_1 = arith.constant 0 : index
    %c0_2 = arith.constant 0 : index
    %1 = vector.load %arg2[%c0_1, %c0_2] : memref<128x128xbf16, #tpu.memory_space<vmem>>, vector<128x128xbf16>
    %cst = arith.constant dense<0.000000e+00> : vector<128x128xf32>
    %2 = tpu.matmul %0, %1, %cst {dimension_numbers = #tpu.dot_dimension_numbers<[1], [0], [0], [1], [0, 0, 1, 1], [], []>} : vector<128x128xbf16>, vector<128x128xbf16>, vector<128x128xf32> -> vector<128x128xf32>
    %c0_3 = arith.constant 0 : index
    %c0_4 = arith.constant 0 : index
    %3 = vector.load %arg3[%c0_3, %c0_4] : memref<1x128xf32, #tpu.memory_space<vmem>>, vector<1x128xf32>
    %4 = vector.broadcast %3 : vector<1x128xf32> to vector<128x128xf32>
    %5 = arith.addf %2, %4 : vector<128x128xf32>
    %cst_5 = arith.constant 0.000000e+00 : f32
    %6 = vector.broadcast %cst_5 : f32 to vector<128x128xf32>
    %7 = arith.maximumf %5, %6 : vector<128x128xf32>
    %8 = arith.truncf %7 : vector<128x128xf32> to vector<128x128xbf16>
    %c0_6 = arith.constant 0 : index
    %c0_7 = arith.constant 0 : index
    %9 = vector.load %arg4[%c0_6, %c0_7] : memref<128x128xbf16, #tpu.memory_space<vmem>>, vector<128x128xbf16>
    %cst_8 = arith.constant dense<0.000000e+00> : vector<128x128xf32>
    %10 = tpu.matmul %8, %9, %cst_8 {dimension_numbers = #tpu.dot_dimension_numbers<[1], [0], [0], [1], [0, 0, 1, 1], [], []>} : vector<128x128xbf16>, vector<128x128xbf16>, vector<128x128xf32> -> vector<128x128xf32>
    %c0_9 = arith.constant 0 : index
    %c0_10 = arith.constant 0 : index
    %11 = vector.load %arg5[%c0_9, %c0_10] : memref<1x128xf32, #tpu.memory_space<vmem>>, vector<1x128xf32>
    %12 = vector.broadcast %11 : vector<1x128xf32> to vector<128x128xf32>
    %13 = arith.addf %10, %12 : vector<128x128xf32>
    %cst_11 = arith.constant 0.000000e+00 : f32
    %14 = vector.broadcast %cst_11 : f32 to vector<128x128xf32>
    %15 = arith.maximumf %13, %14 : vector<128x128xf32>
    %16 = arith.truncf %15 : vector<128x128xf32> to vector<128x128xbf16>
    %c0_12 = arith.constant 0 : index
    %c0_13 = arith.constant 0 : index
    %17 = vector.load %arg6[%c0_12, %c0_13] : memref<128x256xbf16, #tpu.memory_space<vmem>>, vector<128x256xbf16>
    %cst_14 = arith.constant dense<0.000000e+00> : vector<128x256xf32>
    %18 = tpu.matmul %16, %17, %cst_14 {dimension_numbers = #tpu.dot_dimension_numbers<[1], [0], [0], [1], [0, 0, 1, 1], [], []>} : vector<128x128xbf16>, vector<128x256xbf16>, vector<128x256xf32> -> vector<128x256xf32>
    %c0_15 = arith.constant 0 : index
    %c0_16 = arith.constant 0 : index
    %19 = vector.load %arg7[%c0_15, %c0_16] : memref<1x256xf32, #tpu.memory_space<vmem>>, vector<1x256xf32>
    %20 = vector.broadcast %19 : vector<1x256xf32> to vector<128x256xf32>
    %21 = arith.addf %18, %20 : vector<128x256xf32>
    %c0_17 = arith.constant 0 : index
    %c0_18 = arith.constant 0 : index
    %22 = vector.load %arg8[%c0_17, %c0_18] : memref<128x256xf32, #tpu.memory_space<vmem>>, vector<128x256xf32>
    tpu.vector_store %arg8[%c0_17, %c0_18], %21 {strides = array<i32>} : memref<128x256xf32, #tpu.memory_space<vmem>>, vector<128x256xf32>,
    return
  }
  func.func @transform_0(%arg0: i32) -> (i32, i32) {
    %c0_i32 = arith.constant 0 : i32
    %c0_i32_0 = arith.constant 0 : i32
    return %arg0, %c0_i32 : i32, i32
  }
  func.func @transform_1(%arg0: i32) -> (i32, i32) {
    %c0_i32 = arith.constant 0 : i32
    %c0_i32_0 = arith.constant 0 : i32
    %c0_i32_1 = arith.constant 0 : i32
    return %c0_i32, %c0_i32_0 : i32, i32
  }
  func.func @transform_2(%arg0: i32) -> (i32, i32) {
    %c0_i32 = arith.constant 0 : i32
    %c0_i32_0 = arith.constant 0 : i32
    %c0_i32_1 = arith.constant 0 : i32
    return %c0_i32, %c0_i32_0 : i32, i32
  }
  func.func @transform_3(%arg0: i32) -> (i32, i32) {
    %c0_i32 = arith.constant 0 : i32
    %c0_i32_0 = arith.constant 0 : i32
    %c0_i32_1 = arith.constant 0 : i32
    return %c0_i32, %c0_i32_0 : i32, i32
  }
  func.func @transform_4(%arg0: i32) -> (i32, i32) {
    %c0_i32 = arith.constant 0 : i32
    %c0_i32_0 = arith.constant 0 : i32
    %c0_i32_1 = arith.constant 0 : i32
    return %c0_i32, %c0_i32_0 : i32, i32
  }
  func.func @transform_5(%arg0: i32) -> (i32, i32) {
    %c0_i32 = arith.constant 0 : i32
    %c0_i32_0 = arith.constant 0 : i32
    %c0_i32_1 = arith.constant 0 : i32
    return %c0_i32, %c0_i32_0 : i32, i32
  }
  func.func @transform_6(%arg0: i32) -> (i32, i32) {
    %c0_i32 = arith.constant 0 : i32
    %c0_i32_0 = arith.constant 0 : i32
    %c0_i32_1 = arith.constant 0 : i32
    return %c0_i32, %c0_i32_0 : i32, i32
  }
  func.func @transform_7(%arg0: i32) -> (i32, i32) {
    %c0_i32 = arith.constant 0 : i32
    %c0_i32_0 = arith.constant 0 : i32
    return %arg0, %c0_i32 : i32, i32
  }
}

</mosaic_0001>

<bundles_post_ra>
// kernel: tpu_custom_call.1
= control target key start
LH: loop header
LB: loop body
LE: loop exit
PB: predicated region body
PF: predicated region fallthrough
CT: control target
= control target key end

     0   :  { %12 = vsyncpa [#allocation3], 0  ;;  %s2065_s0 = inlined_call_operand.hbm [shape: bf16[256,128], index: 0, kind: input, shape index: {}]   ;;  %s2066_s1 = inlined_call_operand.hbm [shape: bf16[128,128], index: 1, kind: input, shape index: {}]   ;;  %s2067_s2 = inlined_call_operand.vmem [shape: f32[1,128], index: 2, kind: input, shape index: {}]   ;;  %s2068_s3 = inlined_call_operand.hbm [shape: bf16[128,128], index: 3, kind: input, shape index: {}]   ;;  %s2069_s4 = inlined_call_operand.vmem [shape: f32[1,128], index: 4, kind: input, shape index: {}]   ;;  %s2070_s5 = inlined_call_operand.hbm [shape: bf16[128,256], index: 5, kind: input, shape index: {}]   ;;  %s2071_s6 = inlined_call_operand.vmem [shape: f32[1,256], index: 6, kind: input, shape index: {}]   ;;  %s2072_s7 = inlined_call_operand.hbm [shape: f32[256,256], index: 7, kind: output, shape index: {}]  }
   0x1   :  { %14 = vsyncpa [#allocation3 + $0x1], 0 }
   0x2   :  { %15 = vsyncpa [#allocation6], 0 }
   0x3   :  { %16 = vsyncpa [#allocation9], 0 }
   0x4   :  { %17 = vsyncpa [#allocation4], 0 }
   0x5   :  { %19 = vsyncpa [#allocation4 + $0x1], 0  ;;  %s1698_s24 = smov 0   ;;  %s1700_s25 = smov 0  }
   0x6   :  { %s1702_s26 = smov 0   ;;  %s1704_s27 = smov 0  }
   0x7 LB: > { %s1719_s28 = sadd.s32 4294967295, %s1644_s27   ;;  %s1162_s29 = sadd.s32 4294967294, %s1644_s27   ;;  %s1644_s27 = sphi %s1704_s27, %s2098_s27   ;;  %s1640_s26 = sphi %s1702_s26, %s2097_s26   ;;  %s1636_s25 = sphi %s1700_s25, %s2096_s25   ;;  %s1632_s24 = sphi %s1698_s24, %s2095_s24  }
   0x8   : > { %p45_p0 = scmp.ne.s32.totalorder %s1636_s25, %s1632_s24  ;;  %p2073_p1 = scmp.eq.s32.totalorder %s1719_s28, 0 }
   0x9   : > { %p201_p3 = scmp.eq.s32.totalorder %s1162_s29, 1  ;;  %p1163_p5 = scmp.ge.s32.totalorder %s1644_s27, 1 }
   0xa   : > { %p1728_p4 = por %p2073_p1, %p45_p0  ;;  %p208_p7 = scmp.lt.s32.totalorder %s1644_s27, 3 }
   0xb   : > { %p1733_p6 = por %p201_p3, %p45_p0  ;;  %s1646_s10 = smov [#allocation5]  }
   0xc   : > { %s2077_s30 = scalar_select %p1728_p4, 1, 0 }
   0xd   : > { %s2078_s8 = scalar_select %p1733_p6, 1, 0 }
   0xe   : > { %p1738_p8 = pnand %p1163_p5, %p208_p7  ;;  %s220_s11 = sshll.u32 %s1646_s10, 4  ;;  %s1742_s11 = int_to_ptr.vmem [resolvable:$true] %s220_s11 }
   0xf   : > { %2079 = sst [smem:[#allocation15_spill]] %s2078_s8  ;;  %s1647_s13 = smov [#allocation7]  }
  0x10   : > { %s2080_s9 = scalar_select %p1738_p8, 1, 0 }
  0x11   : > { %p1340_p9 = pneg %p1738_p8  ;;  %s236_s14 = sshll.u32 %s1647_s13, 4  ;;  %s1753_s14 = int_to_ptr.vmem [resolvable:$true] %s236_s14 }
  0x12   : > { %s1648_s15 = smov [#allocation8]   ;;  %s1456_s19 = scalar_lea.hbm %s2066_s1, 1024 }
  0x13   : > { %p1749_p11 = pnand %p1340_p9, %p2073_p1  ;;  %s1755_s16 = sshll.u32 %s1648_s15, 4  ;;  %s253_s16 = int_to_ptr.vmem [resolvable:$true] %s1755_s16 }
  0x14   : > { %p1457_p12 = scmp.ne.s32.totalorder %s2066_s1, %s1456_s19  ;;  %p1463_p5 = scmp.lt.u32.totalorder %s1456_s19, %s2066_s1 }
  0x15   : > { %p1765_p13 = pneg %p1749_p11 }
  0x17   : > { %p1459_p0 = pnand %p1765_p13, %p1457_p12 }
  0x19   : > { %p1460_p3 = pneg %p1459_p0 }
  0x1b   : > { %p1465_p7 = pnand %p1463_p5, %p1460_p3 }
  0x1d   : > { %1468 = shalt.err (!%p1465_p7)
}
  0x1e   : > { %s1469_s10 = scalar_lea.vmem %s1742_s11, 1024  ;;  %p1477_p2 = scmp.lt.s32.totalorder %s1742_s11, %s1742_s11 }
  0x1f   : > { %p1470_p9 = scmp.ne.s32.totalorder %s1742_s11, %s1469_s10  ;;  %p1478_p6 = scmp.lt.s32.totalorder %s1469_s10, %s1469_s10 }
  0x21   : > { %p1472_p10 = pnand %p1470_p9, %p1765_p13  ;;  %p1479_p12 = por %p1478_p6, %p1477_p2 }
  0x23   : > { %p1473_p1 = pneg %p1472_p10 }
  0x25   : > { %p1480_p0 = pnand %p1479_p12, %p1473_p1 }
  0x27   : > { %1483 = shalt.err (!%p1480_p0)
}
  0x28   : > { %s1649_s13 = smov 64   ;;  %s1650_s15 = smov 4  }
  0x29   : > { %1343 = dma.hbm_to_vmem [thread:$0]  (!%p1749_p11), %s2066_s1, 1024, %s1742_s11, [#allocation6], %s1649_s13, %s1649_s13, %s1650_s15  }
  0x2a   : > { %s1484_s21 = scalar_lea.hbm %s2068_s3, 1024 }
  0x2b   : > { %p1485_p1 = scmp.ne.s32.totalorder %s2068_s3, %s1484_s21  ;;  %p1491_p10 = scmp.lt.u32.totalorder %s1484_s21, %s2068_s3 }
  0x2d   : > { %p1487_p2 = pnand %p1485_p1, %p1765_p13 }
  0x2f   : > { %p1488_p6 = pneg %p1487_p2 }
  0x31   : > { %p1493_p3 = pnand %p1491_p10, %p1488_p6 }
  0x33   : > { %1496 = shalt.err (!%p1493_p3)
}
  0x34   : > { %s1497_s11 = scalar_lea.vmem %s1753_s14, 1024  ;;  %p1505_p12 = scmp.lt.s32.totalorder %s1753_s14, %s1753_s14 }
  0x35   : > { %p1498_p5 = scmp.ne.s32.totalorder %s1753_s14, %s1497_s11  ;;  %p1506_p0 = scmp.lt.s32.totalorder %s1497_s11, %s1497_s11 }
  0x37   : > { %p1500_p7 = pnand %p1498_p5, %p1765_p13  ;;  %p1507_p1 = por %p1506_p0, %p1505_p12 }
  0x39   : > { %p1501_p9 = pneg %p1500_p7 }
  0x3b   : > { %p1508_p2 = pnand %p1507_p1, %p1501_p9 }
  0x3d   : > { %1511 = shalt.err (!%p1508_p2)
}
  0x3e   : > { %1346 = dma.hbm_to_vmem [thread:$0]  (!%p1749_p11), %s2068_s3, 1024, %s1753_s14, [#allocation6], %s1649_s13, %s1649_s13, %s1650_s15  }
  0x3f   : > { %s1512_s20 = scalar_lea.hbm %s2070_s5, 2048 }
  0x40   : > { %p1513_p6 = scmp.ne.s32.totalorder %s2070_s5, %s1512_s20  ;;  %p1519_p5 = scmp.lt.u32.totalorder %s1512_s20, %s2070_s5 }
  0x42   : > { %p1515_p10 = pnand %p1513_p6, %p1765_p13 }
  0x44   : > { %p1516_p3 = pneg %p1515_p10 }
  0x46   : > { %p1521_p7 = pnand %p1519_p5, %p1516_p3 }
  0x48   : > { %1524 = shalt.err (!%p1521_p7)
}
  0x49   : > { %s1525_s11 = scalar_lea.vmem %s253_s16, 2048  ;;  %p1533_p1 = scmp.lt.s32.totalorder %s253_s16, %s253_s16 }
  0x4a   : > { %p1526_p9 = scmp.ne.s32.totalorder %s253_s16, %s1525_s11  ;;  %p1534_p2 = scmp.lt.s32.totalorder %s1525_s11, %s1525_s11 }
  0x4c   : > { %p1528_p12 = pnand %p1526_p9, %p1765_p13  ;;  %p1535_p4 = por %p1534_p2, %p1533_p1 }
  0x4e   : > { %p1529_p0 = pneg %p1528_p12 }
  0x50   : > { %p1536_p8 = pnand %p1535_p4, %p1529_p0 }
  0x52   : > { %1539 = shalt.err (!%p1536_p8)
}
  0x53   : > { %s1651_s14 = smov 128   ;;  %s1652_s22 = smov 8  }
  0x54   : > { %1349 = dma.hbm_to_vmem [thread:$0]  (!%p1749_p11), %s2070_s5, 2048, %s253_s16, [#allocation9], %s1651_s14, %s1651_s14, %s1652_s22  }
  0x55   : > { %s1835_s18 = sadd.s32 1, %s1644_s27   ;;  %s32_s20 = sadd.s32 1, %s1640_s26 }
  0x56   : > { %s29_s19 = ssub.s32 %s1644_s27, %s1835_s18  ;;  %p39_p8 = scmp.ne.s32.totalorder %s1640_s26, %s1636_s25 }
  0x57   : > { %p30_p4 = scmp.eq.s32.totalorder %s29_s19, 0  ;;  %p40_p13 = scmp.eq.s32.totalorder %s1644_s27, 0 }
  0x58   : > { %p1361_p6 = scmp.lt.s32.totalorder %s1644_s27, 2  ;;  %p2083_p3 = scmp.eq.s32.totalorder %s1719_s28, 1 }
  0x59   : > { %s1845_s21 = scalar_select %p30_p4, %s1640_s26, %s32_s20  }
  0x5a   : > { %p41_p10 = por %p40_p13, %p39_p8  ;;  %p1849_p5 = por %p2083_p3, %p39_p8 }
  0x5b   : > { %s269_s12 = sand.u32 1, %s1640_s26   ;;  %s1225_s29 = sshll.u32 %s1644_s27, 10 }
  0x5c   : > { %s1168_s16 = sshll.u32 %s269_s12, 6  ;;  %s1858_s14 = scalar_lea.hbm %s2065_s0, %s1225_s29 }
  0x5d   : > { %s273_s22 = scalar_lea.vmem [#allocation2], %s1168_s16  ;;  %p1860_p11 = pnand %p1361_p6, %p41_p10 }
  0x5e   : > { %s280_s8 = sshll.u32 %s273_s22, 4  ;;  %s1866_s19 = scalar_lea.sflag [#allocation3], %s269_s12  ;;  %s1864_s8 = int_to_ptr.vmem [resolvable:$true] %s280_s8 }
  0x5f   : > { %s1540_s20 = scalar_lea.hbm %s1858_s14, 1024  ;;  %p1542_p9 = pneg %p1860_p11 }
  0x60   : > { %p1541_p7 = scmp.ne.s32.totalorder %s1858_s14, %s1540_s20  ;;  %s1545_s10 = scalar_lea.hbm %s2065_s0, 2048 }
  0x61   : > { %p1546_p1 = scmp.lt.u32.totalorder %s1858_s14, %s2065_s0  ;;  %p1547_p2 = scmp.lt.u32.totalorder %s1545_s10, %s1540_s20 }
  0x62   : > { %p1543_p12 = pnand %p1542_p9, %p1541_p7  ;;  %p1549_p8 = scmp.lt.u32.totalorder %s1540_s20, %s1858_s14 }
  0x63   : > { %p1548_p4 = por %p1547_p2, %p1546_p1 }
  0x64   : > { %p1544_p0 = pneg %p1543_p12 }
  0x65   : > { %p1550_p13 = por %p1549_p8, %p1548_p4 }
  0x67   : > { %p1551_p6 = pnand %p1550_p13, %p1544_p0 }
  0x69   : > { %1554 = shalt.err (!%p1551_p6)
}
  0x6a   : > { %s1555_s12 = scalar_lea.vmem %s1864_s8, 1024  ;;  %s1653_s29 = smov [#allocation2]  }
  0x6b   : > { %p1556_p10 = scmp.ne.s32.totalorder %s1864_s8, %s1555_s12  ;;  %s1560_s16 = sshll.u32 %s1653_s29, 4  ;;  %s1561_s16 = int_to_ptr.vmem [resolvable:$false] %s1560_s16 }
  0x6c   : > { %s1562_s11 = scalar_lea.vmem %s1561_s16, 2048  ;;  %p1563_p12 = scmp.lt.s32.totalorder %s1864_s8, %s1561_s16 }
  0x6d   : > { %p1558_p3 = pnand %p1556_p10, %p1542_p9  ;;  %p1564_p1 = scmp.lt.s32.totalorder %s1562_s11, %s1555_s12 }
  0x6f   : > { %p1559_p7 = pneg %p1558_p3  ;;  %p1565_p2 = por %p1564_p1, %p1563_p12 }
  0x71   : > { %p1566_p4 = pnand %p1565_p2, %p1559_p7 }
  0x73   : > { %1569 = shalt.err (!%p1566_p4)
}
  0x74   : > { %1353 = dma.hbm_to_vmem [thread:$0]  (!%p1860_p11), %s1858_s14, 1024, %s1864_s8, %s1866_s19, %s1649_s13, %s1649_s13, %s1650_s15  }
  0x75   : > { %p2086_p9 = scmp.ne.s32.totalorder %s2080_s9, 0 }
  0x76   : > { %s1900_s20 = sand.u32 (!%p2086_p9), 1, %s1636_s25   ;;  %p2087_p0 = scmp.ne.s32.totalorder (!%p2086_p9), %s2077_s30, 0 }
  0x77   : > { %292 = sbr.rel (%p2086_p9) target bundleno = 898 (0x382), region = 48  ;;  %s1172_s10 = sshll.u32 (!%p2086_p9), %s1900_s20, 6 }
  0x78   : > { %s295_s22 = scalar_lea.sflag (!%p2086_p9), [#allocation3], %s1900_s20  ;;  %s1904_s12 = scalar_lea.vmem (!%p2086_p9), [#allocation2], %s1172_s10 }
  0x7e   : > { %1615 = dma.done.wait (%p2087_p0), %s295_s22, 1024  }
  0x7f   : > { %1617 = vsyncadd (%p2087_p0), %s295_s22, 4294966272  ;;  %p2088_p11 = scmp.eq.s32.totalorder %s1719_s28, 0 }
  0x81   : > { %1619 = dma.done.wait (%p2088_p11), [#allocation6], 2048   ;;  %p2089_p8 = pmov %p2088_p11 }
  0x83   : > { %1621 = vsyncadd (%p2089_p8), [#allocation6], 4294965248  ;;  %p2090_p13 = pmov %p2089_p8 }
  0x84   : > { %p2091_p6 = pmov %p2089_p8 }
  0x85   : > { %1623 = dma.done.wait (%p2090_p13), [#allocation9], 2048  }
  0x86   : > { %1625 = vsyncadd (%p2091_p6), [#allocation9], 4294965248  ;;  %v1408_v0 = vld [vmem:[#allocation5] sm:$0xff]   ;;  %v1409_v1 = vld [vmem:[#allocation5 + $0x8] sm:$0xff]   ;;  %s1176_s17 = sshll.u32 %s1900_s20, 8  ;;  %s1227_s29 = sshll.u32 %s1719_s28, 12 }
  0x87   : > { %1260 = vmatprep.subr.bf16.mxu1 %v1408_v0  ;;  %v1410_v2 = vld [vmem:[#allocation5 + $0x10] sm:$0xff]   ;;  %v1411_v3 = vld [vmem:[#allocation5 + $0x18] sm:$0xff]   ;;  %v1416_v4 = vld [vmem:[%s1904_s12] sm:$0xff]   ;;  %s1950_s19 = scalar_lea.vmem [#allocation10], %s1176_s17  ;;  %s2015_s22 = scalar_lea.hbm %s2072_s7, %s1227_s29 }
  0x88   : > { %1261 = vmatpush3.bf16.msra.mxu1 %v1408_v0  ;;  %1276 = vmatprep.mubr.bf16.mxu1 %v1416_v4  ;;  %v1412_v5 = vld [vmem:[#allocation5 + $0x20] sm:$0xff]   ;;  %v1413_v6 = vld [vmem:[#allocation5 + $0x28] sm:$0xff]   ;;  %v1414_v7 = vld [vmem:[#allocation5 + $0x30] sm:$0xff]   ;;  %s1060_s16 = sshll.u32 %s1950_s19, 4  ;;  %s1046_s28 = scalar_lea.sflag [#allocation4], %s1900_s20  ;;  %s2017_s16 = int_to_ptr.vmem [resolvable:$true] %s1060_s16 }
  0x89   : > { %1262 = vmatprep.subr.bf16.mxu1 %v1409_v1  ;;  %v1415_v8 = vld [vmem:[#allocation5 + $0x38] sm:$0xff]   ;;  %v1424_v9 = vld [vmem:[#allocation7] sm:$0xff]   ;;  %v1417_v10 = vld [vmem:[%s1904_s12 + $0x8] sm:$0xff]   ;;  %s1655_s30 = smov [#allocation10]  }
  0x8a   : > { %v1418_v11 = vld [vmem:[%s1904_s12 + $0x10] sm:$0xff]   ;;  %v1425_v12 = vld [vmem:[#allocation7 + $0x8] sm:$0xff]   ;;  %v1419_v14 = vld [vmem:[%s1904_s12 + $0x18] sm:$0xff]   ;;  %s1574_s9 = sshll.u32 %s1655_s30, 4  ;;  %s1575_s9 = int_to_ptr.vmem [resolvable:$false] %s1574_s9 }
  0x8b   : > { %v1426_v13 = vld [vmem:[#allocation7 + $0x10] sm:$0xff]   ;;  %v1420_v15 = vld [vmem:[%s1904_s12 + $0x20] sm:$0xff]   ;;  %v1427_v16 = vld [vmem:[#allocation7 + $0x18] sm:$0xff]   ;;  %s1576_s13 = scalar_lea.vmem %s1575_s9, 8192  ;;  %p1577_p12 = scmp.lt.s32.totalorder %s2017_s16, %s1575_s9 }
  0x8c   : > { %1263 = vmatpush3.bf16.msra.mxu1 %v1409_v1  ;;  %v1428_v17 = vld [vmem:[#allocation7 + $0x20] sm:$0xff]   ;;  %v1421_v18 = vld [vmem:[%s1904_s12 + $0x28] sm:$0xff]   ;;  %v1422_v19 = vld [vmem:[%s1904_s12 + $0x30] sm:$0xff]  }
  0x8d   : > { %1264 = vmatprep.subr.bf16.mxu1 %v1410_v2  ;;  %v1429_v20 = vld [vmem:[#allocation7 + $0x28] sm:$0xff]   ;;  %v1423_v21 = vld [vmem:[%s1904_s12 + $0x38] sm:$0xff]   ;;  %v1430_v22 = vld [vmem:[#allocation7 + $0x30] sm:$0xff]   ;;  %s1570_s12 = scalar_lea.vmem %s2017_s16, 4096 }
  0x8e   : > { %v1431_v23 = vld [vmem:[#allocation7 + $0x38] sm:$0xff]   ;;  %v1432_v24 = vld [vmem:[#allocation8 + $0x4] ss:$8 sps:$4 sm:$0xff]   ;;  %v1434_v25 = vld [vmem:[#allocation8] ss:$8 sps:$4 sm:$0xff]   ;;  %p1571_p10 = scmp.ne.s32.totalorder %s2017_s16, %s1570_s12  ;;  %p1578_p1 = scmp.lt.s32.totalorder %s1576_s13, %s1570_s12 }
  0x8f   : > { %v1435_v26 = vld [vmem:[#allocation8 + $0x14] ss:$8 sps:$4 sm:$0xff]   ;;  %900 = vmatprep.subr.bf16.mxu0 %v1432_v24  ;;  %v1437_v27 = vld [vmem:[#allocation8 + $0x10] ss:$8 sps:$4 sm:$0xff]   ;;  %v1438_v28 = vld [vmem:[#allocation8 + $0x24] ss:$8 sps:$4 sm:$0xff]  }
  0x90   : > { %1265 = vmatpush3.bf16.msra.mxu1 %v1410_v2  ;;  %901 = vmatpush1.bf16.msra.mxu0 %v1434_v25  ;;  %v1440_v29 = vld [vmem:[#allocation8 + $0x20] ss:$8 sps:$4 sm:$0xff]   ;;  %v1441_v30 = vld [vmem:[#allocation8 + $0x34] ss:$8 sps:$4 sm:$0xff]   ;;  %v1443_v31 = vld [vmem:[#allocation8 + $0x30] ss:$8 sps:$4 sm:$0xff]   ;;  %p1572_p3 = pnand %p1571_p10, %p1849_p5  ;;  %p1579_p2 = por %p1578_p1, %p1577_p12 }
  0x91   : > { %1266 = vmatprep.subr.bf16.mxu1 %v1411_v3  ;;  %902 = vmatprep.subr.bf16.mxu0 %v1435_v26  ;;  %v1444_v32 = vld [vmem:[#allocation8 + $0x44] ss:$8 sps:$4 sm:$0xff]   ;;  %v1446_v33 = vld [vmem:[#allocation8 + $0x40] ss:$8 sps:$4 sm:$0xff]   ;;  %v1447_v34 = vld [vmem:[#allocation8 + $0x54] ss:$8 sps:$4 sm:$0xff]  }
  0x92   : > { %v1449_v35 = vld [vmem:[#allocation8 + $0x50] ss:$8 sps:$4 sm:$0xff]   ;;  %v1177_v36 = vld [vmem:[%s2067_s2] ss:$0 sm:$0xff]  ;;  %p1573_p7 = pneg %p1572_p3 }
  0x94   : > { %1267 = vmatpush3.bf16.msra.mxu1 %v1411_v3  ;;  %903 = vmatpush1.bf16.msra.mxu0 %v1437_v27  ;;  %p1580_p4 = pnand %p1579_p2, %p1573_p7 }
  0x95   : > { %1268 = vmatprep.subr.bf16.mxu1 %v1412_v5  ;;  %904 = vmatprep.subr.bf16.mxu0 %v1438_v28 }
  0x98   : > { %1269 = vmatpush3.bf16.msra.mxu1 %v1412_v5  ;;  %905 = vmatpush1.bf16.msra.mxu0 %v1440_v29  ;;  %v1450_v29 = vld [vmem:[#allocation8 + $0x64] ss:$8 sps:$4 sm:$0xff]  }
  0x99   : > { %1270 = vmatprep.subr.bf16.mxu1 %v1413_v6  ;;  %906 = vmatprep.subr.bf16.mxu0 %v1441_v30  ;;  %v1452_v30 = vld [vmem:[#allocation8 + $0x60] ss:$8 sps:$4 sm:$0xff]  }
  0x9c   : > { %1271 = vmatpush3.bf16.msra.mxu1 %v1413_v6  ;;  %907 = vmatpush1.bf16.msra.mxu0 %v1443_v31  ;;  %v1453_v31 = vld [vmem:[#allocation8 + $0x74] ss:$8 sps:$4 sm:$0xff]  }
  0x9d   : > { %1272 = vmatprep.subr.bf16.mxu1 %v1414_v7  ;;  %908 = vmatprep.subr.bf16.mxu0 %v1444_v32  ;;  %v1455_v32 = vld [vmem:[#allocation8 + $0x70] ss:$8 sps:$4 sm:$0xff]  }
  0xa0   : > { %1273 = vmatpush3.bf16.msra.mxu1 %v1414_v7  ;;  %909 = vmatpush1.bf16.msra.mxu0 %v1446_v33  ;;  %v1654_v33 = vmov 0  }
  0xa1   : > { %1274 = vmatprep.subr.bf16.mxu1 %v1415_v8  ;;  %910 = vmatprep.subr.bf16.mxu0 %v1447_v34  ;;  %v1194_v34 = vld [vmem:[%s2069_s4] ss:$0 sm:$0xff] }
  0xa2   : > { %932 = vmatprep.mubr.bf16.mxu0 %v1654_v33 }
  0xa4   : > { %1275 = vmatpush3.bf16.msra.mxu1 %v1415_v8  ;;  %911 = vmatpush1.bf16.msra.mxu0 %v1449_v35 }
  0xa5   : > { %1292 = vmatprep.subr.bf16.mxu1 %v1424_v9  ;;  %912 = vmatprep.subr.bf16.mxu0 %v1450_v29 }
  0xa7   : > { %1277 = vmatmul.mubr.bf16.vlgmr.msra.gmra.mrb[0].mxu1 %v1417_v10 }
  0xa8   : > { %1280 = vmatprep.mubr.bf16.mxu1 %v1418_v11  ;;  %1293 = vmatpush3.bf16.msra.mxu1 %v1424_v9 }
  0xa9   : > { %1294 = vmatprep.subr.bf16.mxu1 %v1425_v12  ;;  %913 = vmatpush1.bf16.msra.mxu0 %v1452_v30  ;;  %v808_v30 = vld [vmem:[%s2071_s6] sm:$0x3] }
  0xaa   : > { %914 = vmatprep.subr.bf16.mxu0 %v1453_v31 }
  0xac   : > { %1295 = vmatpush3.bf16.msra.mxu1 %v1425_v12 }
  0xad   : > { %1296 = vmatprep.subr.bf16.mxu1 %v1426_v13  ;;  %915 = vmatpush1.bf16.msra.mxu0 %v1455_v32 }
  0xaf   : > { %1281 = vmatmul.mubr.bf16.gmra.mrb[4].mxu1 %v1419_v14 }
  0xb0   : > { %1284 = vmatprep.mubr.bf16.mxu1 %v1420_v15  ;;  %1297 = vmatpush3.bf16.msra.mxu1 %v1426_v13 }
  0xb1   : > { %1298 = vmatprep.subr.bf16.mxu1 %v1427_v16 }
  0xb4   : > { %1299 = vmatpush3.bf16.msra.mxu1 %v1427_v16 }
  0xb5   : > { %1300 = vmatprep.subr.bf16.mxu1 %v1428_v17 }
  0xb7   : > { %1285 = vmatmul.mubr.bf16.gmra.mrb[8].mxu1 %v1421_v18 }
  0xb8   : > { %1288 = vmatprep.mubr.bf16.mxu1 %v1422_v19  ;;  %1301 = vmatpush3.bf16.msra.mxu1 %v1428_v17 }
  0xb9   : > { %1302 = vmatprep.subr.bf16.mxu1 %v1429_v20 }
  0xbc   : > { %1303 = vmatpush3.bf16.msra.mxu1 %v1429_v20 }
  0xbd   : > { %1304 = vmatprep.subr.bf16.mxu1 %v1430_v22 }
  0xbf   : > { %1289 = vmatmul.mubr.bf16.gmra.mrb[12].mxu1 %v1423_v21 }
  0xc0   : > { %1305 = vmatpush3.bf16.msra.mxu1 %v1430_v22 }
  0xc1   : > { %1306 = vmatprep.subr.bf16.mxu1 %v1431_v23 }
  0xc4   : > { %1307 = vmatpush3.bf16.msra.mxu1 %v1431_v23 }
 0x17a   : > { %v1278_v37 = vpop.f32.mrb[0].mxu1 }
 0x17b   : > { %v522_v38 = vadd.f32 %v1278_v37, %v1177_v36  ;;  %v513_v39 = vpop.f32.mrb[1].mxu1 }
 0x17c   : > { %v514_v40 = vadd.f32 %v1177_v36, %v513_v39  ;;  %v1279_v41 = vpop.f32.mrb[2].mxu1 }
 0x17d   : > { %v525_v42 = vadd.f32 %v1279_v41, %v1177_v36  ;;  %v516_v43 = vpop.f32.mrb[3].mxu1  ;;  %v578_v45 = vmax.f32 %v522_v38, 0.0 }
 0x17e   : > { %v517_v44 = vadd.f32 %v1177_v36, %v516_v43  ;;  %v576_v47 = vmax.f32 %v514_v40, 0.0 }
 0x17f   : > { %v579_v46 = vmax.f32 %v525_v42, 0.0 }
 0x180   : > { %v577_v48 = vmax.f32 %v517_v44, 0.0 }
 0x181   : > { %v593_v49 = vpack.c.bf16 %v579_v46, %v578_v45 }
 0x182   : > { %v592_v50 = vpack.c.bf16 %v577_v48, %v576_v47  ;;  %v1282_v51 = vpop.f32.mrb[4].mxu1 }
 0x183   : > { %v538_v52 = vadd.f32 %v1282_v51, %v1177_v36  ;;  %v529_v53 = vpop.f32.mrb[5].mxu1 }
 0x184   : > { %v530_v54 = vadd.f32 %v1177_v36, %v529_v53  ;;  %1308 = vmatprep.mubr.bf16.mxu1 %v592_v50  ;;  %v1283_v55 = vpop.f32.mrb[6].mxu1 }
 0x185   : > { %v582_v56 = vmax.f32 %v538_v52, 0.0  ;;  %v541_v57 = vadd.f32 %v1283_v55, %v1177_v36  ;;  %1309 = vmatmul.mubr.bf16.vlgmr.msra.gmra.mrb[16].mxu1 %v593_v49  ;;  %v532_v58 = vpop.f32.mrb[7].mxu1 }
 0x186   : > { %v580_v59 = vmax.f32 %v530_v54, 0.0  ;;  %v533_v60 = vadd.f32 %v1177_v36, %v532_v58 }
 0x187   : > { %v583_v61 = vmax.f32 %v541_v57, 0.0 }
 0x188   : > { %v581_v62 = vmax.f32 %v533_v60, 0.0 }
 0x189   : > { %v595_v63 = vpack.c.bf16 %v583_v61, %v582_v56 }
 0x18a   : > { %v594_v0 = vpack.c.bf16 %v581_v62, %v580_v59  ;;  %v1286_v1 = vpop.f32.mrb[8].mxu1 }
 0x18b   : > { %v554_v2 = vadd.f32 %v1286_v1, %v1177_v36  ;;  %v545_v3 = vpop.f32.mrb[9].mxu1 }
 0x18c   : > { %1312 = vmatprep.mubr.bf16.mxu1 %v594_v0  ;;  %v546_v4 = vadd.f32 %v1177_v36, %v545_v3  ;;  %v1287_v5 = vpop.f32.mrb[10].mxu1 }
 0x18d   : > { %1313 = vmatmul.mubr.bf16.gmra.mrb[20].mxu1 %v595_v63  ;;  %v586_v6 = vmax.f32 %v554_v2, 0.0  ;;  %v557_v7 = vadd.f32 %v1287_v5, %v1177_v36  ;;  %v548_v8 = vpop.f32.mrb[11].mxu1 }
 0x18e   : > { %v584_v9 = vmax.f32 %v546_v4, 0.0  ;;  %v549_v10 = vadd.f32 %v1177_v36, %v548_v8 }
 0x18f   : > { %v587_v11 = vmax.f32 %v557_v7, 0.0 }
 0x190   : > { %v585_v12 = vmax.f32 %v549_v10, 0.0 }
 0x191   : > { %v597_v13 = vpack.c.bf16 %v587_v11, %v586_v6 }
 0x192   : > { %v596_v14 = vpack.c.bf16 %v585_v12, %v584_v9  ;;  %v1290_v15 = vpop.f32.mrb[12].mxu1 }
 0x193   : > { %v570_v16 = vadd.f32 %v1290_v15, %v1177_v36  ;;  %v561_v17 = vpop.f32.mrb[13].mxu1 }
 0x194   : > { %1316 = vmatprep.mubr.bf16.mxu1 %v596_v14  ;;  %v562_v18 = vadd.f32 %v1177_v36, %v561_v17  ;;  %v1291_v19 = vpop.f32.mrb[14].mxu1 }
 0x195   : > { %1317 = vmatmul.mubr.bf16.gmra.mrb[24].mxu1 %v597_v13  ;;  %v590_v20 = vmax.f32 %v570_v16, 0.0  ;;  %v573_v21 = vadd.f32 %v1291_v19, %v1177_v36  ;;  %v564_v22 = vpop.f32.mrb[15].mxu1 }
 0x196   : > { %v588_v23 = vmax.f32 %v562_v18, 0.0  ;;  %v565_v24 = vadd.f32 %v1177_v36, %v564_v22 }
 0x197   : > { %v591_v25 = vmax.f32 %v573_v21, 0.0 }
 0x198   : > { %v589_v26 = vmax.f32 %v565_v24, 0.0 }
 0x199   : > { %v599_v27 = vpack.c.bf16 %v591_v25, %v590_v20 }
 0x19a   : > { %v598_v28 = vpack.c.bf16 %v589_v26, %v588_v23 }
 0x19c   : > { %1320 = vmatprep.mubr.bf16.mxu1 %v598_v28 }
 0x19d   : > { %1321 = vmatmul.mubr.bf16.gmra.mrb[28].mxu1 %v599_v27  ;;  %v810_v27 = vlaneseq }
 0x19f   : > { %v811_v28 = vshrl.u32 %v810_v27, 7 }
 0x1a1   : > { %v812_v29 = vsub.s32 0, %v811_v28  ;;  %v816_v31 = vsub.s32 1, %v811_v28 }
 0x1a3   : > { %v1944_v32 = vrot.slane %v808_v30, %v812_v29 }
 0x258   : > { %v1310_v35 = vpop.f32.mrb[16].mxu1 }
 0x259   : > { %v714_v36 = vadd.f32 %v1310_v35, %v1194_v34  ;;  %v705_v37 = vpop.f32.mrb[17].mxu1 }
 0x25a   : > { %v706_v38 = vadd.f32 %v1194_v34, %v705_v37  ;;  %v1311_v39 = vpop.f32.mrb[18].mxu1 }
 0x25b   : > { %v717_v40 = vadd.f32 %v1311_v39, %v1194_v34  ;;  %v708_v41 = vpop.f32.mrb[19].mxu1  ;;  %v770_v43 = vmax.f32 %v714_v36, 0.0 }
 0x25c   : > { %v709_v42 = vadd.f32 %v1194_v34, %v708_v41  ;;  %v768_v45 = vmax.f32 %v706_v38, 0.0 }
 0x25d   : > { %v771_v44 = vmax.f32 %v717_v40, 0.0 }
 0x25e   : > { %v769_v46 = vmax.f32 %v709_v42, 0.0 }
 0x25f   : > { %v785_v47 = vpack.c.bf16 %v771_v44, %v770_v43 }
 0x260   : > { %v784_v48 = vpack.c.bf16 %v769_v46, %v768_v45  ;;  %v1314_v49 = vpop.f32.mrb[20].mxu1 }
 0x261   : > { %v730_v50 = vadd.f32 %v1314_v49, %v1194_v34  ;;  %v721_v51 = vpop.f32.mrb[21].mxu1 }
 0x262   : > { %v722_v52 = vadd.f32 %v1194_v34, %v721_v51  ;;  %933 = vmatmul.mubr.bf16.vlgmr.msra.gmra.mrb[0].mxu0 %v784_v48  ;;  %v1315_v53 = vpop.f32.mrb[22].mxu1 }
 0x263   : > { %v774_v54 = vmax.f32 %v730_v50, 0.0  ;;  %v733_v55 = vadd.f32 %v1315_v53, %v1194_v34  ;;  %v724_v56 = vpop.f32.mrb[23].mxu1  ;;  %942 = vmatprep.mubr.bf16.mxu0 %v1654_v33 }
 0x264   : > { %v772_v57 = vmax.f32 %v722_v52, 0.0  ;;  %v725_v58 = vadd.f32 %v1194_v34, %v724_v56 }
 0x265   : > { %v775_v59 = vmax.f32 %v733_v55, 0.0 }
 0x266   : > { %v773_v60 = vmax.f32 %v725_v58, 0.0 }
 0x267   : > { %v787_v61 = vpack.c.bf16 %v775_v59, %v774_v54 }
 0x268   : > { %v786_v62 = vpack.c.bf16 %v773_v60, %v772_v57  ;;  %v1318_v63 = vpop.f32.mrb[24].mxu1 }
 0x269   : > { %v746_v0 = vadd.f32 %v1318_v63, %v1194_v34  ;;  %v737_v1 = vpop.f32.mrb[25].mxu1 }
 0x26a   : > { %943 = vmatmul.mubr.bf16.gmra.mrb[4].mxu0 %v785_v47  ;;  %v738_v2 = vadd.f32 %v1194_v34, %v737_v1  ;;  %v1319_v3 = vpop.f32.mrb[26].mxu1 }
 0x26b   : > { %v778_v4 = vmax.f32 %v746_v0, 0.0  ;;  %952 = vmatprep.mubr.bf16.mxu0 %v1654_v33  ;;  %v749_v5 = vadd.f32 %v1319_v3, %v1194_v34  ;;  %v740_v6 = vpop.f32.mrb[27].mxu1 }
 0x26c   : > { %v776_v7 = vmax.f32 %v738_v2, 0.0  ;;  %v741_v8 = vadd.f32 %v1194_v34, %v740_v6 }
 0x26d   : > { %v779_v9 = vmax.f32 %v749_v5, 0.0 }
 0x26e   : > { %v777_v10 = vmax.f32 %v741_v8, 0.0 }
 0x26f   : > { %v789_v11 = vpack.c.bf16 %v779_v9, %v778_v4 }
 0x270   : > { %v788_v12 = vpack.c.bf16 %v777_v10, %v776_v7  ;;  %v1322_v13 = vpop.f32.mrb[28].mxu1 }
 0x271   : > { %v762_v14 = vadd.f32 %v1322_v13, %v1194_v34  ;;  %v753_v15 = vpop.f32.mrb[29].mxu1 }
 0x272   : > { %953 = vmatmul.mubr.bf16.gmra.mrb[8].mxu0 %v786_v62  ;;  %v754_v16 = vadd.f32 %v1194_v34, %v753_v15  ;;  %v1323_v17 = vpop.f32.mrb[30].mxu1 }
 0x273   : > { %962 = vmatprep.mubr.bf16.mxu0 %v1654_v33  ;;  %v782_v18 = vmax.f32 %v762_v14, 0.0  ;;  %v765_v19 = vadd.f32 %v1323_v17, %v1194_v34  ;;  %v756_v20 = vpop.f32.mrb[31].mxu1 }
 0x274   : > { %v780_v21 = vmax.f32 %v754_v16, 0.0  ;;  %v757_v22 = vadd.f32 %v1194_v34, %v756_v20  ;;  %v1946_v34 = vrot.slane %v808_v30, %v816_v31 }
 0x275   : > { %v783_v23 = vmax.f32 %v765_v19, 0.0 }
 0x276   : > { %v781_v24 = vmax.f32 %v757_v22, 0.0 }
 0x277   : > { %v791_v25 = vpack.c.bf16 %v783_v23, %v782_v18 }
 0x278   : > { %v790_v26 = vpack.c.bf16 %v781_v24, %v780_v21 }
 0x27a   : > { %963 = vmatmul.mubr.bf16.gmra.mrb[12].mxu0 %v787_v61 }
 0x27b   : > { %972 = vmatprep.mubr.bf16.mxu0 %v1654_v33 }
 0x282   : > { %973 = vmatmul.mubr.bf16.gmra.mrb[16].mxu0 %v788_v12 }
 0x283   : > { %982 = vmatprep.mubr.bf16.mxu0 %v1654_v33 }
 0x28a   : > { %983 = vmatmul.mubr.bf16.gmra.mrb[20].mxu0 %v789_v11 }
 0x28b   : > { %992 = vmatprep.mubr.bf16.mxu0 %v1654_v33 }
 0x292   : > { %993 = vmatmul.mubr.bf16.gmra.mrb[24].mxu0 %v790_v26 }
 0x293   : > { %1002 = vmatprep.mubr.bf16.mxu0 %v1654_v33 }
 0x29a   : > { %1003 = vmatmul.mubr.bf16.gmra.mrb[28].mxu0 %v791_v25 }
 0x335   : > { %v934_v35 = vpop.f32.mrb[0].mxu0 }
 0x336   : > { %v935_v36 = vadd.f32 %v934_v35, %v1944_v32  ;;  %v936_v37 = vpop.f32.mrb[1].mxu0 }
 0x337   : > { %v937_v33 = vadd.f32 %v936_v37, %v1946_v34  ;;  %v938_v38 = vpop.f32.mrb[2].mxu0 }
 0x338   : > { %1013 = vst [vmem:[%s1950_s19] sm:$0xff] %v935_v36  ;;  %v939_v39 = vadd.f32 %v938_v38, %v1944_v32  ;;  %v940_v40 = vpop.f32.mrb[3].mxu0 }
 0x339   : > { %1014 = vst [vmem:[%s1950_s19 + $0x8] sm:$0xff] %v937_v33  ;;  %v941_v41 = vadd.f32 %v940_v40, %v1946_v34 }
 0x33a   : > { %1015 = vst [vmem:[%s1950_s19 + $0x10] sm:$0xff] %v939_v39 }
 0x33b   : > { %1016 = vst [vmem:[%s1950_s19 + $0x18] sm:$0xff] %v941_v41 }
 0x33d   : > { %v944_v42 = vpop.f32.mrb[4].mxu0 }
 0x33e   : > { %v945_v43 = vadd.f32 %v944_v42, %v1944_v32  ;;  %v946_v44 = vpop.f32.mrb[5].mxu0 }
 0x33f   : > { %v947_v45 = vadd.f32 %v946_v44, %v1946_v34  ;;  %v948_v46 = vpop.f32.mrb[6].mxu0 }
 0x340   : > { %1017 = vst [vmem:[%s1950_s19 + $0x20] sm:$0xff] %v945_v43  ;;  %v949_v47 = vadd.f32 %v948_v46, %v1944_v32  ;;  %v950_v48 = vpop.f32.mrb[7].mxu0 }
 0x341   : > { %1018 = vst [vmem:[%s1950_s19 + $0x28] sm:$0xff] %v947_v45  ;;  %v951_v49 = vadd.f32 %v950_v48, %v1946_v34 }
 0x342   : > { %1019 = vst [vmem:[%s1950_s19 + $0x30] sm:$0xff] %v949_v47 }
 0x343   : > { %1020 = vst [vmem:[%s1950_s19 + $0x38] sm:$0xff] %v951_v49 }
 0x345   : > { %v954_v50 = vpop.f32.mrb[8].mxu0 }
 0x346   : > { %v955_v51 = vadd.f32 %v954_v50, %v1944_v32  ;;  %v956_v52 = vpop.f32.mrb[9].mxu0 }
 0x347   : > { %v957_v53 = vadd.f32 %v956_v52, %v1946_v34  ;;  %v958_v54 = vpop.f32.mrb[10].mxu0 }
 0x348   : > { %1021 = vst [vmem:[%s1950_s19 + $0x40] sm:$0xff] %v955_v51  ;;  %v959_v55 = vadd.f32 %v958_v54, %v1944_v32  ;;  %v960_v56 = vpop.f32.mrb[11].mxu0 }
 0x349   : > { %1022 = vst [vmem:[%s1950_s19 + $0x48] sm:$0xff] %v957_v53  ;;  %v961_v57 = vadd.f32 %v960_v56, %v1946_v34 }
 0x34a   : > { %1023 = vst [vmem:[%s1950_s19 + $0x50] sm:$0xff] %v959_v55 }
 0x34b   : > { %1024 = vst [vmem:[%s1950_s19 + $0x58] sm:$0xff] %v961_v57 }
 0x34d   : > { %v964_v58 = vpop.f32.mrb[12].mxu0 }
 0x34e   : > { %v965_v59 = vadd.f32 %v964_v58, %v1944_v32  ;;  %v966_v60 = vpop.f32.mrb[13].mxu0 }
 0x34f   : > { %v967_v61 = vadd.f32 %v966_v60, %v1946_v34  ;;  %v968_v62 = vpop.f32.mrb[14].mxu0 }
 0x350   : > { %1025 = vst [vmem:[%s1950_s19 + $0x60] sm:$0xff] %v965_v59  ;;  %v969_v63 = vadd.f32 %v968_v62, %v1944_v32  ;;  %v970_v0 = vpop.f32.mrb[15].mxu0 }
 0x351   : > { %1026 = vst [vmem:[%s1950_s19 + $0x68] sm:$0xff] %v967_v61  ;;  %v971_v1 = vadd.f32 %v970_v0, %v1946_v34 }
 0x352   : > { %1027 = vst [vmem:[%s1950_s19 + $0x70] sm:$0xff] %v969_v63 }
 0x353   : > { %1028 = vst [vmem:[%s1950_s19 + $0x78] sm:$0xff] %v971_v1 }
 0x355   : > { %v974_v2 = vpop.f32.mrb[16].mxu0 }
 0x356   : > { %v975_v3 = vadd.f32 %v974_v2, %v1944_v32  ;;  %v976_v4 = vpop.f32.mrb[17].mxu0 }
 0x357   : > { %v977_v5 = vadd.f32 %v976_v4, %v1946_v34  ;;  %v978_v6 = vpop.f32.mrb[18].mxu0 }
 0x358   : > { %1029 = vst [vmem:[%s1950_s19 + $0x80] sm:$0xff] %v975_v3  ;;  %v979_v7 = vadd.f32 %v978_v6, %v1944_v32  ;;  %v980_v8 = vpop.f32.mrb[19].mxu0 }
 0x359   : > { %1030 = vst [vmem:[%s1950_s19 + $0x88] sm:$0xff] %v977_v5  ;;  %v981_v9 = vadd.f32 %v980_v8, %v1946_v34 }
 0x35a   : > { %1031 = vst [vmem:[%s1950_s19 + $0x90] sm:$0xff] %v979_v7 }
 0x35b   : > { %1032 = vst [vmem:[%s1950_s19 + $0x98] sm:$0xff] %v981_v9 }
 0x35d   : > { %v984_v10 = vpop.f32.mrb[20].mxu0 }
 0x35e   : > { %v985_v11 = vadd.f32 %v984_v10, %v1944_v32  ;;  %v986_v12 = vpop.f32.mrb[21].mxu0 }
 0x35f   : > { %v987_v13 = vadd.f32 %v986_v12, %v1946_v34  ;;  %v988_v14 = vpop.f32.mrb[22].mxu0 }
 0x360   : > { %1033 = vst [vmem:[%s1950_s19 + $0xa0] sm:$0xff] %v985_v11  ;;  %v989_v15 = vadd.f32 %v988_v14, %v1944_v32  ;;  %v990_v16 = vpop.f32.mrb[23].mxu0 }
 0x361   : > { %1034 = vst [vmem:[%s1950_s19 + $0xa8] sm:$0xff] %v987_v13  ;;  %v991_v17 = vadd.f32 %v990_v16, %v1946_v34 }
 0x362   : > { %1035 = vst [vmem:[%s1950_s19 + $0xb0] sm:$0xff] %v989_v15 }
 0x363   : > { %1036 = vst [vmem:[%s1950_s19 + $0xb8] sm:$0xff] %v991_v17 }
 0x365   : > { %v994_v18 = vpop.f32.mrb[24].mxu0 }
 0x366   : > { %v995_v19 = vadd.f32 %v994_v18, %v1944_v32  ;;  %v996_v20 = vpop.f32.mrb[25].mxu0 }
 0x367   : > { %v997_v21 = vadd.f32 %v996_v20, %v1946_v34  ;;  %v998_v22 = vpop.f32.mrb[26].mxu0 }
 0x368   : > { %1037 = vst [vmem:[%s1950_s19 + $0xc0] sm:$0xff] %v995_v19  ;;  %v999_v23 = vadd.f32 %v998_v22, %v1944_v32  ;;  %v1000_v24 = vpop.f32.mrb[27].mxu0 }
 0x369   : > { %1038 = vst [vmem:[%s1950_s19 + $0xc8] sm:$0xff] %v997_v21  ;;  %v1001_v25 = vadd.f32 %v1000_v24, %v1946_v34 }
 0x36a   : > { %1039 = vst [vmem:[%s1950_s19 + $0xd0] sm:$0xff] %v999_v23 }
 0x36b   : > { %1040 = vst [vmem:[%s1950_s19 + $0xd8] sm:$0xff] %v1001_v25 }
 0x36d   : > { %v1004_v26 = vpop.f32.mrb[28].mxu0 }
 0x36e   : > { %v1005_v27 = vadd.f32 %v1004_v26, %v1944_v32  ;;  %v1006_v28 = vpop.f32.mrb[29].mxu0 }
 0x36f   : > { %v1007_v29 = vadd.f32 %v1006_v28, %v1946_v34  ;;  %v1008_v30 = vpop.f32.mrb[30].mxu0 }
 0x370   : > { %1041 = vst [vmem:[%s1950_s19 + $0xe0] sm:$0xff] %v1005_v27  ;;  %v1009_v31 = vadd.f32 %v1008_v30, %v1944_v32  ;;  %v1010_v35 = vpop.f32.mrb[31].mxu0 }
 0x371   : > { %1042 = vst [vmem:[%s1950_s19 + $0xe8] sm:$0xff] %v1007_v29  ;;  %v1011_v36 = vadd.f32 %v1010_v35, %v1946_v34 }
 0x372   : > { %1043 = vst [vmem:[%s1950_s19 + $0xf0] sm:$0xff] %v1009_v31 }
 0x373   : > { %1044 = vst [vmem:[%s1950_s19 + $0xf8] sm:$0xff] %v1011_v36 }
 0x374   : > { %1583 = shalt.err (!%p1580_p4)
}
 0x375   : > { %s1584_s15 = scalar_lea.hbm %s2015_s22, 4096  ;;  %s1588_s17 = scalar_lea.hbm %s2072_s7, 8192 }
 0x376   : > { %p1585_p9 = scmp.ne.s32.totalorder %s2015_s22, %s1584_s15  ;;  %p1589_p8 = scmp.lt.u32.totalorder %s2015_s22, %s2072_s7 }
 0x377   : > { %p1590_p13 = scmp.lt.u32.totalorder %s1588_s17, %s1584_s15  ;;  %p1592_p10 = scmp.lt.u32.totalorder %s1584_s15, %s2015_s22 }
 0x378   : > { %p1586_p0 = pnand %p1585_p9, %p1849_p5 }
 0x379   : > { %p1591_p6 = por %p1590_p13, %p1589_p8 }
 0x37a   : > { %p1587_p11 = pneg %p1586_p0 }
 0x37b   : > { %p1593_p3 = por %p1592_p10, %p1591_p6 }
 0x37d   : > { %p1594_p7 = pnand %p1593_p3, %p1587_p11 }
 0x37f   : > { %1597 = shalt.err (!%p1594_p7)
}
 0x380   : > { %s1656_s11 = smov 256   ;;  %s1657_s10 = smov 16  }
 0x381   : > { %1338 = dma.vmem_to_hbm [thread:$0]  (%p1849_p5), %s2017_s16, 4096, %s2015_s22, %s1046_s28, %s1656_s11, %s1656_s11, %s1657_s10  }
 0x382 PF: > { %s2092_s12 = sld [smem:[#allocation15_spill]]  ;;  %s1075_s30 = sand.u32 1, %s1632_s24  }
 0x383   : > { %p2094_p1 = scmp.ge.s32.totalorder %s1644_s27, 2  ;;  %s1076_s9 = scalar_lea.sflag [#allocation4], %s1075_s30 }
 0x388   : > { %p2093_p12 = scmp.ne.s32.totalorder %s2092_s12, 0 }
 0x38a   : > { %p1355_p2 = pnand %p2094_p1, %p2093_p12 }
 0x38c   : > { %1627 = dma.done.wait (!%p1355_p2), %s1076_s9, 4096  }
 0x38d   : > { %1629 = vsyncadd (!%p1355_p2), %s1076_s9, 4294963200  ;;  %p22_p4 = scmp.ge.s32.totalorder %s1835_s18, 4   ;;  %s2095_s24 = smov %s1636_s25 }
 0x38e   : > { %s2096_s25 = smov %s1640_s26  ;;  %s2097_s26 = smov %s1845_s21 }
 0x38f   : > { %s2098_s27 = smov %s1835_s18  ;;  %24 = sbr.rel (!%p22_p4) target bundleno = 7 (0x7), region = 105 }
 0x396   :  { %1081 = vsyncpa [#allocation3], 1 }
 0x397   :  { %1083 = vsyncpa [#allocation3 + $0x1], 1 }
 0x398   :  { %1084 = vsyncpa [#allocation6], 1 }
 0x399   :  { %1085 = vsyncpa [#allocation9], 1 }
 0x39a   :  { %1086 = vsyncpa [#allocation4], 1 }
 0x39b   :  { %1088 = vsyncpa [#allocation4 + $0x1], 1 }

</bundles_post_ra>
